<compile_context>
chip_gen: v7x
topology: tpu7x:2x2x1
jax: 0.10.0
libtpu: 0.0.40
codegen_flags: <defaults>
</compile_context>

<pallas_src>
import functools

import jax
import jax.numpy as jnp
from jax.experimental import pallas as pl
from jax.experimental.pallas import tpu as pltpu


def _round_up(x, m):
    return ((x + m - 1) // m) * m


def _device_kind():
    try:
        return jax.devices()[0].device_kind.lower()
    except Exception:
        return ""


def _num_tensorcores():
    # v7x has 2 TensorCores per chip; v5e/v6e have 1.
    kind = _device_kind()
    return 2 if ("v7" in kind or "tpu7" in kind) else 1


def _vmem_capacity_bytes():
    try:
        cap = getattr(pltpu.get_tpu_info(), "vmem_capacity_bytes", None)
        if cap:
            return int(cap)
    except Exception:
        pass
    kind = _device_kind()
    return (64 << 20) if ("v7" in kind or "tpu7" in kind) else (128 << 20)


def _choose_batch_tile(batch, num_cores):
    """16-aligned (bf16 sublane) batch tile; real rows split across TensorCores."""
    padded = _round_up(batch, 16)
    per_core = _round_up(pl.cdiv(padded, max(num_cores, 1)), 16)
    if per_core <= 128:
        return per_core                      # one tile per core, never an all-pad tile
    return min(_round_up(per_core, 128), 512)  # 128-aligned; cap 512 (256-multiple, MXU)


def _vmem_budget_bytes(batch_tile, padded_dims, const_bytes, x_itemsize, out_itemsize,
                       single_buffer_weights, capacity):
    """Generation-aware VMEM budget with headroom for Mosaic scratch/spills/sems."""
    x_tile = batch_tile * padded_dims[0] * x_itemsize
    o_tile = batch_tile * padded_dims[-1] * out_itemsize
    act = batch_tile * max(padded_dims) * 4          # largest live f32 activation
    w_factor = 1 if single_buffer_weights else 2
    need = 2 * (x_tile + o_tile) + w_factor * const_bytes + 2 * act
    cap = int(capacity * 0.8)                        # ~51 MiB on v7x, ~102 MiB on v5e/v6e
    return max(min(int(1.25 * need) + (4 << 20), cap), 16 << 20)


def _mlp_kernel(n_layers, padded_dims, x_ref, *refs):
    """Fused MLP kernel.

    refs = (w_0, ..., w_{L-1}, bias_ref, o_ref).
    bf16 MXU operands, f32 accumulate / bias / ReLU (fast VPU path on all parts).
    ReLU after every layer except the last (PolyLinear convention).
    """
    o_ref = refs[-1]
    b_ref = refs[-2]
    w_refs = refs[:-2]

    h = x_ref[...].astype(jnp.bfloat16)      # no-op if x already bf16 (padded path)
    off = 0
    for layer in range(n_layers):
        do = padded_dims[layer + 1]
        acc = jnp.dot(h, w_refs[layer][...], preferred_element_type=jnp.float32)
        acc = acc + b_ref[:, off:off + do]   # f32 bias add; static 128-aligned slice
        off += do
        if layer != n_layers - 1:
            h = jnp.maximum(acc, 0.0).astype(jnp.bfloat16)   # nn.ReLU(), then narrow
        else:
            o_ref[...] = acc.astype(o_ref.dtype)


def vae_embedding_attacker_forward(x, params, *, batch_tile=None, out_dtype=jnp.float32):
    """Run the fused MLP forward pass with a Pallas TPU kernel.

    x:      [B, dims[0]] float32
    params: list of (W, b) with W: [d_in, d_out] f32, b: [1, d_out] f32
    Returns [B, dims[-1]] `out_dtype` logits.
    """
    # TODO(synk): input_dropout is a no-op at inference; not modeled in-kernel.
    n_layers = len(params)
    B, d_in = x.shape
    dims = [d_in] + [int(w.shape[1]) for (w, _) in params]
    # Pad every feature dim to a lane-dense multiple of 128 (exact math: padded x
    # columns multiply zero weight rows, padded output columns get zero bias).
    padded_dims = [_round_up(d, 128) for d in dims]

    num_cores = _num_tensorcores()
    if batch_tile is None:
        batch_tile = _choose_batch_tile(B, num_cores)
    batch_tile = max(_round_up(int(batch_tile), 8), 8)
    padded_b = _round_up(B, batch_tile)
    grid = (padded_b // batch_tile,)

    # Input: skip the wrapper-side pad+cast materialization when x is already tileable
    # (saves a full HBM round trip); otherwise pad+cast to bf16 (halves padded-x DMA).
    needs_pad = (padded_b != B) or (padded_dims[0] != d_in)
    if needs_pad:
        x_in = jnp.zeros((padded_b, padded_dims[0]), jnp.bfloat16)
        x_in = x_in.at[:B, :d_in].set(x.astype(jnp.bfloat16))
    else:
        x_in = x  # streamed directly; cast to bf16 inside the kernel

    # bf16 zero-padded weights; one packed f32 bias vector (single buffer, single DMA).
    w_list = []
    for layer, (w, _) in enumerate(params):
        di, do = padded_dims[layer], padded_dims[layer + 1]
        w_p = jnp.zeros((di, do), jnp.bfloat16).at[: w.shape[0], : w.shape[1]].set(
            w.astype(jnp.bfloat16))
        w_list.append(w_p)
    total_bias = sum(padded_dims[1:])
    bias_p = jnp.zeros((1, total_bias), jnp.float32)
    off = 0
    for layer, (_, b) in enumerate(params):
        b2 = b.reshape(1, -1).astype(jnp.float32)
        bias_p = bias_p.at[:, off:off + b2.shape[-1]].set(b2)
        off += padded_dims[layer + 1]

    const_bytes = (sum(int(a.size) * a.dtype.itemsize for a in w_list)
                   + int(bias_p.size) * 4)
    capacity = _vmem_capacity_bytes()
    out_itemsize = jnp.dtype(out_dtype).itemsize

    flops = 2 * padded_b * sum(padded_dims[l] * padded_dims[l + 1]
                               for l in range(n_layers))
    bytes_accessed = (int(x_in.size) * x_in.dtype.itemsize + const_bytes
                      + padded_b * padded_dims[-1] * out_itemsize)
    cost = pl.CostEstimate(flops=int(flops), transcendentals=0,
                           bytes_accessed=int(bytes_accessed))

    kernel = functools.partial(_mlp_kernel, n_layers, tuple(padded_dims))

    # TODO(synk): if const_bytes exceeds ~half the VMEM budget (huge hidden dims on
    # v7x's 64 MiB), fall back to tiling the widest layer over its output-feature axis
    # with an extra "arbitrary" grid axis instead of requiring full weight residency.
    def _run(single_buffer_weights):
        def _const_spec(shape):
            # Grid-invariant block: its index never changes, so single-buffer it.
            if single_buffer_weights:
                return pl.BlockSpec(shape, lambda i: (0,) * len(shape),
                                    pipeline_mode=pl.Buffered(1))
            return pl.BlockSpec(shape, lambda i: (0,) * len(shape))

        in_specs = [pl.BlockSpec((batch_tile, padded_dims[0]), lambda i: (i, 0))]
        for layer in range(n_layers):
            in_specs.append(_const_spec((padded_dims[layer], padded_dims[layer + 1])))
        in_specs.append(_const_spec((1, total_bias)))
        out_spec = pl.BlockSpec((batch_tile, padded_dims[-1]), lambda i: (i, 0))

        vmem_budget = _vmem_budget_bytes(
            batch_tile, padded_dims, const_bytes,
            x_in.dtype.itemsize, out_itemsize, single_buffer_weights, capacity)

        return pl.pallas_call(
            kernel,
            out_shape=jax.ShapeDtypeStruct((padded_b, padded_dims[-1]), out_dtype),
            grid=grid,
            in_specs=in_specs,
            out_specs=out_spec,
            compiler_params=pltpu.CompilerParams(
                dimension_semantics=("parallel",),
                vmem_limit_bytes=vmem_budget),
            cost_estimate=cost,
        )(x_in, *w_list, bias_p)

    try:
        out_p = _run(True)
    except Exception:
        # pipeline_mode=pl.Buffered(1) unsupported by this JAX/Mosaic build: use
        # default double-buffering (correctness identical, slightly more VMEM).
        out_p = _run(False)

    # Slice padding back off (batch rows and lane-padded output columns).
    return out_p[:B, : dims[-1]]


def init_params(key, dims):
    """Deterministic init mimicking general_weight_init (normal weights, zero bias)."""
    params = []
    for d_in, d_out in zip(dims[:-1], dims[1:]):
        key, wk = jax.random.split(key)
        w = jax.random.normal(wk, (d_in, d_out), dtype=jnp.float32) * (1.0 / jnp.sqrt(d_in))
        b = jnp.zeros((1, d_out), dtype=jnp.float32)
        params.append((w, b))
    return params


def reference_forward(x, params):
    h = x
    for i, (w, b) in enumerate(params):
        h = h @ w + b
        if i != len(params) - 1:
            h = jnp.maximum(h, 0.0)
    return h


if __name__ == "__main__":
    key = jax.random.PRNGKey(0)

    # Config 1: categorical-feature attacker head (embedding 32 -> hidden -> 4 classes);
    # exercises the row + lane padding path.
    dims = [32, 64, 16, 4]
    batch = 8
    key, xk, pk = jax.random.split(key, 3)
    x = jax.random.normal(xk, (batch, dims[0]), dtype=jnp.float32)
    params = init_params(pk, dims)

    out = jax.block_until_ready(vae_embedding_attacker_forward(x, params))
    ref = reference_forward(x, params)
    assert out.shape == (batch, dims[-1])
    # bf16 MXU operands -> looser tolerance than the pure-f32 path.
    assert jnp.allclose(out, ref, atol=3e-2, rtol=3e-2), "Pallas output mismatch (config 1)"

    # Config 2: lane-aligned input, exercises the no-pad fast path (x streamed as f32,
    # cast to bf16 inside the kernel).
    dims2 = [128, 64, 5]
    batch2 = 16
    key, xk2, pk2 = jax.random.split(key, 3)
    x2 = jax.random.normal(xk2, (batch2, dims2[0]), dtype=jnp.float32)
    params2 = init_params(pk2, dims2)

    out2 = jax.block_until_ready(vae_embedding_attacker_forward(x2, params2))
    ref2 = reference_forward(x2, params2)
    assert out2.shape == (batch2, dims2[-1])
    assert jnp.allclose(out2, ref2, atol=3e-2, rtol=3e-2), "Pallas output mismatch (config 2)"

    print("KERNEL_OK")
</pallas_src>

<mosaic_0001>
module attributes {stable_mosaic.version = 11 : i64} {
  func.func @_mlp_kernel(%arg0: i32, %arg1: memref<16x128xbf16, #tpu.memory_space<vmem>>, %arg2: memref<128x128xbf16, #tpu.memory_space<vmem>>, %arg3: memref<128x128xbf16, #tpu.memory_space<vmem>>, %arg4: memref<128x128xbf16, #tpu.memory_space<vmem>>, %arg5: memref<1x384xf32, #tpu.memory_space<vmem>>, %arg6: memref<16x128xf32, #tpu.memory_space<vmem>>) attributes {dimension_semantics = [#tpu.dimension_semantics<parallel>], iteration_bounds = array<i64: 1>, scalar_prefetch = 0 : i64, scratch_operands = 0 : i64, tpu.core_type = #tpu.core_type<tc>, window_params = [{transform_indices = @transform_0, window_bounds = array<i64: 16, 128>}, {pipeline_mode = #tpu.pipeline_mode<synchronous>, transform_indices = @transform_1, window_bounds = array<i64: 128, 128>}, {pipeline_mode = #tpu.pipeline_mode<synchronous>, transform_indices = @transform_2, window_bounds = array<i64: 128, 128>}, {pipeline_mode = #tpu.pipeline_mode<synchronous>, transform_indices = @transform_3, window_bounds = array<i64: 128, 128>}, {pipeline_mode = #tpu.pipeline_mode<synchronous>, transform_indices = @transform_4, window_bounds = array<i64: 1, 384>}, {transform_indices = @transform_5, window_bounds = array<i64: 16, 128>}]} {
    %c0 = arith.constant 0 : index
    %c0_0 = arith.constant 0 : index
    %0 = vector.load %arg1[%c0, %c0_0] : memref<16x128xbf16, #tpu.memory_space<vmem>>, vector<16x128xbf16>
    %c0_1 = arith.constant 0 : index
    %c0_2 = arith.constant 0 : index
    %1 = vector.load %arg2[%c0_1, %c0_2] : memref<128x128xbf16, #tpu.memory_space<vmem>>, vector<128x128xbf16>
    %cst = arith.constant dense<0.000000e+00> : vector<16x128xf32>
    %2 = tpu.matmul %0, %1, %cst {dimension_numbers = #tpu.dot_dimension_numbers<[1], [0], [0], [1], [0, 0, 1, 1], [], []>} : vector<16x128xbf16>, vector<128x128xbf16>, vector<16x128xf32> -> vector<16x128xf32>
    %c0_3 = arith.constant 0 : index
    %c0_4 = arith.constant 0 : index
    %3 = vector.load %arg5[%c0_3, %c0_4] : memref<1x384xf32, #tpu.memory_space<vmem>>, vector<1x128xf32>
    %4 = vector.broadcast %3 : vector<1x128xf32> to vector<16x128xf32>
    %5 = arith.addf %2, %4 : vector<16x128xf32>
    %cst_5 = arith.constant 0.000000e+00 : f32
    %6 = vector.broadcast %cst_5 : f32 to vector<16x128xf32>
    %7 = arith.maximumf %5, %6 : vector<16x128xf32>
    %8 = arith.truncf %7 : vector<16x128xf32> to vector<16x128xbf16>
    %c0_6 = arith.constant 0 : index
    %c0_7 = arith.constant 0 : index
    %9 = vector.load %arg3[%c0_6, %c0_7] : memref<128x128xbf16, #tpu.memory_space<vmem>>, vector<128x128xbf16>
    %cst_8 = arith.constant dense<0.000000e+00> : vector<16x128xf32>
    %10 = tpu.matmul %8, %9, %cst_8 {dimension_numbers = #tpu.dot_dimension_numbers<[1], [0], [0], [1], [0, 0, 1, 1], [], []>} : vector<16x128xbf16>, vector<128x128xbf16>, vector<16x128xf32> -> vector<16x128xf32>
    %c0_9 = arith.constant 0 : index
    %c128 = arith.constant 128 : index
    %11 = vector.load %arg5[%c0_9, %c128] : memref<1x384xf32, #tpu.memory_space<vmem>>, vector<1x128xf32>
    %12 = vector.broadcast %11 : vector<1x128xf32> to vector<16x128xf32>
    %13 = arith.addf %10, %12 : vector<16x128xf32>
    %cst_10 = arith.constant 0.000000e+00 : f32
    %14 = vector.broadcast %cst_10 : f32 to vector<16x128xf32>
    %15 = arith.maximumf %13, %14 : vector<16x128xf32>
    %16 = arith.truncf %15 : vector<16x128xf32> to vector<16x128xbf16>
    %c0_11 = arith.constant 0 : index
    %c0_12 = arith.constant 0 : index
    %17 = vector.load %arg4[%c0_11, %c0_12] : memref<128x128xbf16, #tpu.memory_space<vmem>>, vector<128x128xbf16>
    %cst_13 = arith.constant dense<0.000000e+00> : vector<16x128xf32>
    %18 = tpu.matmul %16, %17, %cst_13 {dimension_numbers = #tpu.dot_dimension_numbers<[1], [0], [0], [1], [0, 0, 1, 1], [], []>} : vector<16x128xbf16>, vector<128x128xbf16>, vector<16x128xf32> -> vector<16x128xf32>
    %c0_14 = arith.constant 0 : index
    %c256 = arith.constant 256 : index
    %19 = vector.load %arg5[%c0_14, %c256] : memref<1x384xf32, #tpu.memory_space<vmem>>, vector<1x128xf32>
    %20 = vector.broadcast %19 : vector<1x128xf32> to vector<16x128xf32>
    %21 = arith.addf %18, %20 : vector<16x128xf32>
    %c0_15 = arith.constant 0 : index
    %c0_16 = arith.constant 0 : index
    %22 = vector.load %arg6[%c0_15, %c0_16] : memref<16x128xf32, #tpu.memory_space<vmem>>, vector<16x128xf32>
    tpu.vector_store %arg6[%c0_15, %c0_16], %21 {strides = array<i32>} : memref<16x128xf32, #tpu.memory_space<vmem>>, vector<16x128xf32>,
    return
  }
  func.func @transform_0(%arg0: i32) -> (i32, i32) {
    %c0_i32 = arith.constant 0 : i32
    %c0_i32_0 = arith.constant 0 : i32
    return %arg0, %c0_i32 : i32, i32
  }
  func.func @transform_1(%arg0: i32) -> (i32, i32) {
    %c0_i32 = arith.constant 0 : i32
    %c0_i32_0 = arith.constant 0 : i32
    %c0_i32_1 = arith.constant 0 : i32
    return %c0_i32, %c0_i32_0 : i32, i32
  }
  func.func @transform_2(%arg0: i32) -> (i32, i32) {
    %c0_i32 = arith.constant 0 : i32
    %c0_i32_0 = arith.constant 0 : i32
    %c0_i32_1 = arith.constant 0 : i32
    return %c0_i32, %c0_i32_0 : i32, i32
  }
  func.func @transform_3(%arg0: i32) -> (i32, i32) {
    %c0_i32 = arith.constant 0 : i32
    %c0_i32_0 = arith.constant 0 : i32
    %c0_i32_1 = arith.constant 0 : i32
    return %c0_i32, %c0_i32_0 : i32, i32
  }
  func.func @transform_4(%arg0: i32) -> (i32, i32) {
    %c0_i32 = arith.constant 0 : i32
    %c0_i32_0 = arith.constant 0 : i32
    %c0_i32_1 = arith.constant 0 : i32
    return %c0_i32, %c0_i32_0 : i32, i32
  }
  func.func @transform_5(%arg0: i32) -> (i32, i32) {
    %c0_i32 = arith.constant 0 : i32
    %c0_i32_0 = arith.constant 0 : i32
    return %arg0, %c0_i32 : i32, i32
  }
}

module attributes {stable_mosaic.version = 11 : i64} {
  func.func @_mlp_kernel(%arg0: i32, %arg1: memref<16x128xbf16, #tpu.memory_space<vmem>>, %arg2: memref<128x128xbf16, #tpu.memory_space<vmem>>, %arg3: memref<128x128xbf16, #tpu.memory_space<vmem>>, %arg4: memref<128x128xbf16, #tpu.memory_space<vmem>>, %arg5: memref<1x384xf32, #tpu.memory_space<vmem>>, %arg6: memref<16x128xf32, #tpu.memory_space<vmem>>) attributes {dimension_semantics = [#tpu.dimension_semantics<parallel>], iteration_bounds = array<i64: 1>, scalar_prefetch = 0 : i64, scratch_operands = 0 : i64, tpu.core_type = #tpu.core_type<tc>, window_params = [{transform_indices = @transform_0, window_bounds = array<i64: 16, 128>}, {pipeline_mode = #tpu.pipeline_mode<synchronous>, transform_indices = @transform_1, window_bounds = array<i64: 128, 128>}, {pipeline_mode = #tpu.pipeline_mode<synchronous>, transform_indices = @transform_2, window_bounds = array<i64: 128, 128>}, {pipeline_mode = #tpu.pipeline_mode<synchronous>, transform_indices = @transform_3, window_bounds = array<i64: 128, 128>}, {pipeline_mode = #tpu.pipeline_mode<synchronous>, transform_indices = @transform_4, window_bounds = array<i64: 1, 384>}, {transform_indices = @transform_5, window_bounds = array<i64: 16, 128>}]} {
    %c0 = arith.constant 0 : index
    %c0_0 = arith.constant 0 : index
    %0 = vector.load %arg1[%c0, %c0_0] : memref<16x128xbf16, #tpu.memory_space<vmem>>, vector<16x128xbf16>
    %c0_1 = arith.constant 0 : index
    %c0_2 = arith.constant 0 : index
    %1 = vector.load %arg2[%c0_1, %c0_2] : memref<128x128xbf16, #tpu.memory_space<vmem>>, vector<128x128xbf16>
    %cst = arith.constant dense<0.000000e+00> : vector<16x128xf32>
    %2 = tpu.matmul %0, %1, %cst {dimension_numbers = #tpu.dot_dimension_numbers<[1], [0], [0], [1], [0, 0, 1, 1], [], []>} : vector<16x128xbf16>, vector<128x128xbf16>, vector<16x128xf32> -> vector<16x128xf32>
    %c0_3 = arith.constant 0 : index
    %c0_4 = arith.constant 0 : index
    %3 = vector.load %arg5[%c0_3, %c0_4] : memref<1x384xf32, #tpu.memory_space<vmem>>, vector<1x128xf32>
    %4 = vector.broadcast %3 : vector<1x128xf32> to vector<16x128xf32>
    %5 = arith.addf %2, %4 : vector<16x128xf32>
    %cst_5 = arith.constant 0.000000e+00 : f32
    %6 = vector.broadcast %cst_5 : f32 to vector<16x128xf32>
    %7 = arith.maximumf %5, %6 : vector<16x128xf32>
    %8 = arith.truncf %7 : vector<16x128xf32> to vector<16x128xbf16>
    %c0_6 = arith.constant 0 : index
    %c0_7 = arith.constant 0 : index
    %9 = vector.load %arg3[%c0_6, %c0_7] : memref<128x128xbf16, #tpu.memory_space<vmem>>, vector<128x128xbf16>
    %cst_8 = arith.constant dense<0.000000e+00> : vector<16x128xf32>
    %10 = tpu.matmul %8, %9, %cst_8 {dimension_numbers = #tpu.dot_dimension_numbers<[1], [0], [0], [1], [0, 0, 1, 1], [], []>} : vector<16x128xbf16>, vector<128x128xbf16>, vector<16x128xf32> -> vector<16x128xf32>
    %c0_9 = arith.constant 0 : index
    %c128 = arith.constant 128 : index
    %11 = vector.load %arg5[%c0_9, %c128] : memref<1x384xf32, #tpu.memory_space<vmem>>, vector<1x128xf32>
    %12 = vector.broadcast %11 : vector<1x128xf32> to vector<16x128xf32>
    %13 = arith.addf %10, %12 : vector<16x128xf32>
    %cst_10 = arith.constant 0.000000e+00 : f32
    %14 = vector.broadcast %cst_10 : f32 to vector<16x128xf32>
    %15 = arith.maximumf %13, %14 : vector<16x128xf32>
    %16 = arith.truncf %15 : vector<16x128xf32> to vector<16x128xbf16>
    %c0_11 = arith.constant 0 : index
    %c0_12 = arith.constant 0 : index
    %17 = vector.load %arg4[%c0_11, %c0_12] : memref<128x128xbf16, #tpu.memory_space<vmem>>, vector<128x128xbf16>
    %cst_13 = arith.constant dense<0.000000e+00> : vector<16x128xf32>
    %18 = tpu.matmul %16, %17, %cst_13 {dimension_numbers = #tpu.dot_dimension_numbers<[1], [0], [0], [1], [0, 0, 1, 1], [], []>} : vector<16x128xbf16>, vector<128x128xbf16>, vector<16x128xf32> -> vector<16x128xf32>
    %c0_14 = arith.constant 0 : index
    %c256 = arith.constant 256 : index
    %19 = vector.load %arg5[%c0_14, %c256] : memref<1x384xf32, #tpu.memory_space<vmem>>, vector<1x128xf32>
    %20 = vector.broadcast %19 : vector<1x128xf32> to vector<16x128xf32>
    %21 = arith.addf %18, %20 : vector<16x128xf32>
    %c0_15 = arith.constant 0 : index
    %c0_16 = arith.constant 0 : index
    %22 = vector.load %arg6[%c0_15, %c0_16] : memref<16x128xf32, #tpu.memory_space<vmem>>, vector<16x128xf32>
    tpu.vector_store %arg6[%c0_15, %c0_16], %21 {strides = array<i32>} : memref<16x128xf32, #tpu.memory_space<vmem>>, vector<16x128xf32>,
    return
  }
  func.func @transform_0(%arg0: i32) -> (i32, i32) {
    %c0_i32 = arith.constant 0 : i32
    %c0_i32_0 = arith.constant 0 : i32
    return %arg0, %c0_i32 : i32, i32
  }
  func.func @transform_1(%arg0: i32) -> (i32, i32) {
    %c0_i32 = arith.constant 0 : i32
    %c0_i32_0 = arith.constant 0 : i32
    %c0_i32_1 = arith.constant 0 : i32
    return %c0_i32, %c0_i32_0 : i32, i32
  }
  func.func @transform_2(%arg0: i32) -> (i32, i32) {
    %c0_i32 = arith.constant 0 : i32
    %c0_i32_0 = arith.constant 0 : i32
    %c0_i32_1 = arith.constant 0 : i32
    return %c0_i32, %c0_i32_0 : i32, i32
  }
  func.func @transform_3(%arg0: i32) -> (i32, i32) {
    %c0_i32 = arith.constant 0 : i32
    %c0_i32_0 = arith.constant 0 : i32
    %c0_i32_1 = arith.constant 0 : i32
    return %c0_i32, %c0_i32_0 : i32, i32
  }
  func.func @transform_4(%arg0: i32) -> (i32, i32) {
    %c0_i32 = arith.constant 0 : i32
    %c0_i32_0 = arith.constant 0 : i32
    %c0_i32_1 = arith.constant 0 : i32
    return %c0_i32, %c0_i32_0 : i32, i32
  }
  func.func @transform_5(%arg0: i32) -> (i32, i32) {
    %c0_i32 = arith.constant 0 : i32
    %c0_i32_0 = arith.constant 0 : i32
    return %arg0, %c0_i32 : i32, i32
  }
}

</mosaic_0001>

<bundles_post_ra>
// kernel: tpu_custom_call.1
= control target key start
LH: loop header
LB: loop body
LE: loop exit
PB: predicated region body
PF: predicated region fallthrough
CT: control target
= control target key end

     0   :  { %10 = vsyncpa [#allocation3], 0  ;;  %s883_s0 = inlined_call_operand.hbm [shape: bf16[16,128], index: 0, kind: input, shape index: {}]   ;;  %s884_s1 = inlined_call_operand.hbm [shape: bf16[128,128], index: 1, kind: input, shape index: {}]   ;;  %s885_s2 = inlined_call_operand.hbm [shape: bf16[128,128], index: 2, kind: input, shape index: {}]   ;;  %s886_s3 = inlined_call_operand.hbm [shape: bf16[128,128], index: 3, kind: input, shape index: {}]   ;;  %s887_s4 = inlined_call_operand.vmem [shape: f32[1,384], index: 4, kind: input, shape index: {}]   ;;  %s888_s5 = inlined_call_operand.hbm [shape: f32[16,128], index: 5, kind: output, shape index: {}]  }
   0x1   :  { %11 = vsyncpa [#allocation6], 0 }
   0x2   :  { %12 = vsyncpa [#allocation9], 0 }
   0x3   :  { %13 = vsyncpa [#allocation4], 0  ;;  %s717_s18 = smov [#allocation5]   ;;  %s718_s20 = smov [#allocation2]  }
   0x4   :  { %s31_s19 = sshll.u32 %s717_s18, 4  ;;  %s19_s21 = sshll.u32 %s718_s20, 4  ;;  %s32_s19 = int_to_ptr.vmem [resolvable:$true] %s31_s19  ;;  %s758_s21 = int_to_ptr.vmem [resolvable:$true] %s19_s21 }
   0x5   :  { %s599_s24 = scalar_lea.hbm %s884_s1, 1024 }
   0x6   :  { %p600_p0 = scmp.ne.s32.totalorder %s884_s1, %s599_s24  ;;  %p603_p1 = scmp.lt.u32.totalorder %s599_s24, %s884_s1 }
   0x8   :  { %p605_p2 = pnand %p603_p1, %p600_p0 }
   0xa   :  { %608 = shalt.err (!%p605_p2)
}
   0xb   :  { %s609_s29 = scalar_lea.vmem %s32_s19, 1024  ;;  %p614_p4 = scmp.lt.s32.totalorder %s32_s19, %s32_s19 }
   0xc   :  { %p610_p3 = scmp.ne.s32.totalorder %s32_s19, %s609_s29  ;;  %p615_p5 = scmp.lt.s32.totalorder %s609_s29, %s609_s29 }
   0xe   :  { %p616_p6 = por %p615_p5, %p614_p4 }
  0x10   :  { %p617_p7 = pnand %p616_p6, %p610_p3 }
  0x12   :  { %620 = shalt.err (!%p617_p7)
}
  0x13   :  { %s719_s30 = smov 64   ;;  %s720_s6 = smov 4  }
  0x14   :  { %37 = dma.hbm_to_vmem [thread:$0]  %s884_s1, 1024, %s32_s19, [#allocation6], %s719_s30, %s719_s30, %s720_s6  }
  0x15   :  { %s621_s11 = scalar_lea.hbm %s883_s0, 128 }
  0x16   :  { %p622_p8 = scmp.ne.s32.totalorder %s883_s0, %s621_s11  ;;  %p625_p9 = scmp.lt.u32.totalorder %s621_s11, %s883_s0 }
  0x18   :  { %p627_p10 = pnand %p625_p9, %p622_p8 }
  0x1a   :  { %630 = shalt.err (!%p627_p10)
}
  0x1b   :  { %s631_s16 = scalar_lea.vmem %s758_s21, 128  ;;  %p636_p12 = scmp.lt.s32.totalorder %s758_s21, %s758_s21 }
  0x1c   :  { %p632_p11 = scmp.ne.s32.totalorder %s758_s21, %s631_s16  ;;  %p637_p13 = scmp.lt.s32.totalorder %s631_s16, %s631_s16 }
  0x1e   :  { %p638_p0 = por %p637_p13, %p636_p12 }
  0x20   :  { %p639_p1 = pnand %p638_p0, %p632_p11 }
  0x22   :  { %642 = shalt.err (!%p639_p1)
}
  0x23   :  { %25 = dma.hbm_to_vmem [thread:$0]  %s883_s0, 128, %s758_s21, [#allocation3], %s719_s30, %s719_s30, %s720_s6  }
  0x24   :  { %s721_s18 = smov [#allocation7]   ;;  %s722_s20 = smov [#allocation8]  }
  0x25   :  { %s43_s19 = sshll.u32 %s721_s18, 4  ;;  %s55_s22 = sshll.u32 %s722_s20, 4  ;;  %s44_s19 = int_to_ptr.vmem [resolvable:$true] %s43_s19  ;;  %s795_s22 = int_to_ptr.vmem [resolvable:$true] %s55_s22 }
  0x26   :  { %s643_s25 = scalar_lea.hbm %s885_s2, 1024 }
  0x27   :  { %p644_p2 = scmp.ne.s32.totalorder %s885_s2, %s643_s25  ;;  %p647_p3 = scmp.lt.u32.totalorder %s643_s25, %s885_s2 }
  0x29   :  { %p649_p4 = pnand %p647_p3, %p644_p2 }
  0x2b   :  { %652 = shalt.err (!%p649_p4)
}
  0x2c   :  { %s653_s0 = scalar_lea.vmem %s44_s19, 1024  ;;  %p658_p6 = scmp.lt.s32.totalorder %s44_s19, %s44_s19 }
  0x2d   :  { %p654_p5 = scmp.ne.s32.totalorder %s44_s19, %s653_s0  ;;  %p659_p7 = scmp.lt.s32.totalorder %s653_s0, %s653_s0 }
  0x2f   :  { %p660_p8 = por %p659_p7, %p658_p6 }
  0x31   :  { %p661_p9 = pnand %p660_p8, %p654_p5 }
  0x33   :  { %664 = shalt.err (!%p661_p9)
}
  0x34   :  { %49 = dma.hbm_to_vmem [thread:$0]  %s885_s2, 1024, %s44_s19, [#allocation6], %s719_s30, %s719_s30, %s720_s6  }
  0x35   :  { %s665_s10 = scalar_lea.hbm %s886_s3, 1024 }
  0x36   :  { %p666_p10 = scmp.ne.s32.totalorder %s886_s3, %s665_s10  ;;  %p669_p11 = scmp.lt.u32.totalorder %s665_s10, %s886_s3 }
  0x38   :  { %p671_p12 = pnand %p669_p11, %p666_p10 }
  0x3a   :  { %674 = shalt.err (!%p671_p12)
}
  0x3b   :  { %s675_s15 = scalar_lea.vmem %s795_s22, 1024  ;;  %p680_p0 = scmp.lt.s32.totalorder %s795_s22, %s795_s22 }
  0x3c   :  { %p676_p13 = scmp.ne.s32.totalorder %s795_s22, %s675_s15  ;;  %p681_p1 = scmp.lt.s32.totalorder %s675_s15, %s675_s15 }
  0x3e   :  { %p682_p2 = por %p681_p1, %p680_p0 }
  0x40   :  { %p683_p3 = pnand %p682_p2, %p676_p13 }
  0x42   :  { %686 = shalt.err (!%p683_p3)
}
  0x43   :  { %61 = dma.hbm_to_vmem [thread:$0]  %s886_s3, 1024, %s795_s22, [#allocation9], %s719_s30, %s719_s30, %s720_s6  }
  0x44   :  { %709 = dma.done.wait [#allocation3], 128  }
  0x45   :  { %710 = vsyncadd [#allocation3], 4294967168 }
  0x46   :  { %711 = dma.done.wait [#allocation6], 2048  }
  0x47   :  { %712 = vsyncadd [#allocation6], 4294965248 }
  0x48   :  { %713 = dma.done.wait [#allocation9], 1024  }
  0x49   :  { %714 = vsyncadd [#allocation9], 4294966272  ;;  %v723_v0 = vmov 0.0   ;;  %vm724_vm0 = vmmov 0   ;;  %v574_v1 = vld [vmem:[#allocation5] sm:$0xff]   ;;  %v575_v2 = vld [vmem:[#allocation5 + $0x8] sm:$0xff]  }
  0x4a   :  { %503 = vmatprep.subr.bf16.mxu0 %v723_v0  ;;  %519 = vmatprep.mubr.msk.bf16.mxu0 %vm724_vm0, %v723_v0  ;;  %v576_v3 = vld [vmem:[#allocation5 + $0x10] sm:$0xff]   ;;  %v583_v4 = vld [vmem:[#allocation7] sm:$0xff]   ;;  %v577_v5 = vld [vmem:[#allocation5 + $0x18] sm:$0xff]   ;;  %s725_s19 = smov [#allocation10]  }
  0x4b   :  { %523 = vmatprep.subr.bf16.mxu1 %v723_v0  ;;  %539 = vmatprep.mubr.msk.bf16.mxu1 %vm724_vm0, %v723_v0  ;;  %v584_v6 = vld [vmem:[#allocation7 + $0x8] sm:$0xff]   ;;  %v578_v7 = vld [vmem:[#allocation5 + $0x20] sm:$0xff]   ;;  %v585_v8 = vld [vmem:[#allocation7 + $0x10] sm:$0xff]   ;;  %s434_s20 = sshll.u32 %s725_s19, 4  ;;  %s435_s20 = int_to_ptr.vmem [resolvable:$true] %s434_s20 }
  0x4c   :  { %504 = vmatpush3.bf16.msra.mxu0 %v574_v1  ;;  %524 = vmatpush3.bf16.msra.mxu1 %v583_v4  ;;  %v579_v9 = vld [vmem:[#allocation5 + $0x28] sm:$0xff]   ;;  %v586_v10 = vld [vmem:[#allocation7 + $0x18] sm:$0xff]   ;;  %v580_v11 = vld [vmem:[#allocation5 + $0x30] sm:$0xff]   ;;  %s687_s22 = scalar_lea.vmem %s435_s20, 256  ;;  %p692_p5 = scmp.lt.s32.totalorder %s435_s20, %s435_s20 }
  0x4d   :  { %505 = vmatprep.subr.bf16.mxu0 %v723_v0  ;;  %525 = vmatprep.subr.bf16.mxu1 %v723_v0  ;;  %v587_v12 = vld [vmem:[#allocation7 + $0x20] sm:$0xff]   ;;  %v581_v13 = vld [vmem:[#allocation5 + $0x38] sm:$0xff]   ;;  %v588_v14 = vld [vmem:[#allocation7 + $0x28] sm:$0xff]   ;;  %p688_p4 = scmp.ne.s32.totalorder %s435_s20, %s687_s22  ;;  %p693_p6 = scmp.lt.s32.totalorder %s687_s22, %s687_s22 }
  0x4e   :  { %v582_v15 = vld [vmem:[#allocation2] sm:$0xff]   ;;  %v589_v16 = vld [vmem:[#allocation7 + $0x30] sm:$0xff]   ;;  %v591_v18 = vld [vmem:[#allocation8] sm:$0xff]  }
  0x4f   :  { %v590_v17 = vld [vmem:[#allocation7 + $0x38] sm:$0xff]   ;;  %v592_v19 = vld [vmem:[#allocation8 + $0x8] sm:$0xff]   ;;  %v593_v20 = vld [vmem:[#allocation8 + $0x10] sm:$0xff]   ;;  %p694_p7 = por %p693_p6, %p692_p5 }
  0x50   :  { %506 = vmatpush3.bf16.msra.mxu0 %v575_v2  ;;  %526 = vmatpush3.bf16.msra.mxu1 %v584_v6  ;;  %v594_v21 = vld [vmem:[#allocation8 + $0x18] sm:$0xff]   ;;  %v595_v22 = vld [vmem:[#allocation8 + $0x20] sm:$0xff]   ;;  %v596_v23 = vld [vmem:[#allocation8 + $0x28] sm:$0xff]  }
  0x51   :  { %507 = vmatprep.subr.bf16.mxu0 %v723_v0  ;;  %527 = vmatprep.subr.bf16.mxu1 %v723_v0  ;;  %v448_v24 = vld [vmem:[%s887_s4] ss:$0 sm:$0xff]  ;;  %v597_v34 = vld [vmem:[#allocation8 + $0x30] sm:$0xff]   ;;  %v458_v36 = vld [vmem:[%s887_s4 + $0x1] ss:$0 sm:$0xff]  ;;  %p695_p8 = pnand %p694_p7, %p688_p4 }
  0x52   :  { %v598_v35 = vld [vmem:[#allocation8 + $0x38] sm:$0xff]  }
  0x53   :  { %v467_v46 = vld [vmem:[%s887_s4 + $0x2] ss:$0 sm:$0xff] }
  0x54   :  { %508 = vmatpush3.bf16.msra.mxu0 %v576_v3  ;;  %528 = vmatpush3.bf16.msra.mxu1 %v585_v8 }
  0x55   :  { %509 = vmatprep.subr.bf16.mxu0 %v723_v0  ;;  %529 = vmatprep.subr.bf16.mxu1 %v723_v0 }
  0x58   :  { %510 = vmatpush3.bf16.msra.mxu0 %v577_v5  ;;  %530 = vmatpush3.bf16.msra.mxu1 %v586_v10 }
  0x59   :  { %511 = vmatprep.subr.bf16.mxu0 %v723_v0  ;;  %531 = vmatprep.subr.bf16.mxu1 %v723_v0 }
  0x5c   :  { %512 = vmatpush3.bf16.msra.mxu0 %v578_v7  ;;  %532 = vmatpush3.bf16.msra.mxu1 %v587_v12 }
  0x5d   :  { %513 = vmatprep.subr.bf16.mxu0 %v723_v0  ;;  %533 = vmatprep.subr.bf16.mxu1 %v723_v0 }
  0x60   :  { %514 = vmatpush3.bf16.msra.mxu0 %v579_v9  ;;  %534 = vmatpush3.bf16.msra.mxu1 %v588_v14 }
  0x61   :  { %515 = vmatprep.subr.bf16.mxu0 %v723_v0  ;;  %535 = vmatprep.subr.bf16.mxu1 %v723_v0 }
  0x64   :  { %516 = vmatpush3.bf16.msra.mxu0 %v580_v11  ;;  %536 = vmatpush3.bf16.msra.mxu1 %v589_v16 }
  0x65   :  { %517 = vmatprep.subr.bf16.mxu0 %v723_v0  ;;  %537 = vmatprep.subr.bf16.mxu1 %v723_v0 }
  0x68   :  { %518 = vmatpush3.bf16.msra.mxu0 %v581_v13  ;;  %538 = vmatpush3.bf16.msra.mxu1 %v590_v17 }
  0x69   :  { %543 = vmatprep.subr.bf16.mxu0 %v723_v0 }
  0x6b   :  { %520 = vmatmul.mubr.bf16.vlgmr.msra.gmra.mrb[0].mxu0 %v582_v15 }
  0x6c   :  { %559 = vmatprep.mubr.msk.bf16.mxu0 %vm724_vm0, %v723_v0  ;;  %544 = vmatpush3.bf16.msra.mxu0 %v591_v18 }
  0x6d   :  { %545 = vmatprep.subr.bf16.mxu0 %v723_v0 }
  0x70   :  { %546 = vmatpush3.bf16.msra.mxu0 %v592_v19 }
  0x71   :  { %547 = vmatprep.subr.bf16.mxu0 %v723_v0 }
  0x74   :  { %548 = vmatpush3.bf16.msra.mxu0 %v593_v20 }
  0x75   :  { %549 = vmatprep.subr.bf16.mxu0 %v723_v0 }
  0x78   :  { %550 = vmatpush3.bf16.msra.mxu0 %v594_v21 }
  0x79   :  { %551 = vmatprep.subr.bf16.mxu0 %v723_v0 }
  0x7c   :  { %552 = vmatpush3.bf16.msra.mxu0 %v595_v22 }
  0x7d   :  { %553 = vmatprep.subr.bf16.mxu0 %v723_v0 }
  0x80   :  { %554 = vmatpush3.bf16.msra.mxu0 %v596_v23 }
  0x81   :  { %555 = vmatprep.subr.bf16.mxu0 %v723_v0 }
  0x84   :  { %556 = vmatpush3.bf16.msra.mxu0 %v597_v34 }
  0x85   :  { %557 = vmatprep.subr.bf16.mxu0 %v723_v0 }
  0x88   :  { %558 = vmatpush3.bf16.msra.mxu0 %v598_v35 }
 0x13e   :  { %v190_v25 = vpop.f32.mrb[0].mxu0 }
 0x13f   :  { %v191_v26 = vadd.f32 %v448_v24, %v190_v25  ;;  %v521_v27 = vpop.f32.mrb[1].mxu0 }
 0x140   :  { %v193_v28 = vpop.f32.mrb[2].mxu0 }
 0x141   :  { %v194_v29 = vadd.f32 %v448_v24, %v193_v28  ;;  %v522_v30 = vpop.f32.mrb[3].mxu0  ;;  %v197_v31 = vmax.f32 %v191_v26, 0.0 }
 0x143   :  { %v198_v32 = vmax.f32 %v194_v29, 0.0 }
 0x145   :  { %v199_v33 = vpack.c.bf16 %v198_v32, %v197_v31 }
 0x147   :  { %540 = vmatmul.mubr.bf16.vlgmr.msra.gmra.mrb[0].mxu1 %v199_v33 }
 0x21a   :  { %v305_v37 = vpop.f32.mrb[0].mxu1 }
 0x21b   :  { %v306_v38 = vadd.f32 %v458_v36, %v305_v37  ;;  %v541_v39 = vpop.f32.mrb[1].mxu1 }
 0x21c   :  { %v308_v40 = vpop.f32.mrb[2].mxu1 }
 0x21d   :  { %v309_v41 = vadd.f32 %v458_v36, %v308_v40  ;;  %v542_v42 = vpop.f32.mrb[3].mxu1  ;;  %v312_v43 = vmax.f32 %v306_v38, 0.0 }
 0x21f   :  { %v313_v44 = vmax.f32 %v309_v41, 0.0 }
 0x221   :  { %v314_v45 = vpack.c.bf16 %v313_v44, %v312_v43 }
 0x223   :  { %560 = vmatmul.mubr.bf16.vlgmr.msra.gmra.mrb[4].mxu0 %v314_v45 }
 0x2f6   :  { %v420_v47 = vpop.f32.mrb[4].mxu0 }
 0x2f7   :  { %v421_v48 = vadd.f32 %v467_v46, %v420_v47  ;;  %v561_v49 = vpop.f32.mrb[5].mxu0 }
 0x2f8   :  { %v423_v50 = vpop.f32.mrb[6].mxu0 }
 0x2f9   :  { %427 = vst [vmem:[#allocation10] sm:$0xff] %v421_v48  ;;  %v424_v51 = vadd.f32 %v467_v46, %v423_v50  ;;  %v562_v52 = vpop.f32.mrb[7].mxu0 }
 0x2fb   :  { %428 = vst [vmem:[#allocation10 + $0x8] sm:$0xff] %v424_v51 }
 0x2fc   :  { %698 = shalt.err (!%p695_p8)
}
 0x2fd   :  { %s699_s24 = scalar_lea.hbm %s888_s5, 256 }
 0x2fe   :  { %p700_p9 = scmp.ne.s32.totalorder %s888_s5, %s699_s24  ;;  %p703_p10 = scmp.lt.u32.totalorder %s699_s24, %s888_s5 }
 0x300   :  { %p705_p11 = pnand %p703_p10, %p700_p9 }
 0x302   :  { %708 = shalt.err (!%p705_p11)
}
 0x303   :  { %s726_s29 = smov 128   ;;  %s727_s0 = smov 8  }
 0x304   :  { %440 = dma.vmem_to_hbm [thread:$0]  %s435_s20, 256, %s888_s5, [#allocation4], %s726_s29, %s726_s29, %s727_s0  }
 0x305   :  { %715 = dma.done.wait [#allocation4], 256  }
 0x306   :  { %716 = vsyncadd [#allocation4], 4294967040 }
 0x307   :  { %444 = vsyncpa [#allocation3], 1 }
 0x308   :  { %445 = vsyncpa [#allocation6], 1 }
 0x309   :  { %446 = vsyncpa [#allocation9], 1 }
 0x30a   :  { %447 = vsyncpa [#allocation4], 1 }

// kernel: tpu_custom_call.1
= control target key start
LH: loop header
LB: loop body
LE: loop exit
PB: predicated region body
PF: predicated region fallthrough
CT: control target
= control target key end

     0   :  { %10 = vsyncpa [#allocation3], 0  ;;  %s883_s0 = inlined_call_operand.hbm [shape: bf16[16,128], index: 0, kind: input, shape index: {}]   ;;  %s884_s1 = inlined_call_operand.hbm [shape: bf16[128,128], index: 1, kind: input, shape index: {}]   ;;  %s885_s2 = inlined_call_operand.hbm [shape: bf16[128,128], index: 2, kind: input, shape index: {}]   ;;  %s886_s3 = inlined_call_operand.hbm [shape: bf16[128,128], index: 3, kind: input, shape index: {}]   ;;  %s887_s4 = inlined_call_operand.vmem [shape: f32[1,384], index: 4, kind: input, shape index: {}]   ;;  %s888_s5 = inlined_call_operand.hbm [shape: f32[16,128], index: 5, kind: output, shape index: {}]  }
   0x1   :  { %11 = vsyncpa [#allocation6], 0 }
   0x2   :  { %12 = vsyncpa [#allocation9], 0 }
   0x3   :  { %13 = vsyncpa [#allocation4], 0  ;;  %s717_s18 = smov [#allocation5]   ;;  %s718_s20 = smov [#allocation2]  }
   0x4   :  { %s31_s19 = sshll.u32 %s717_s18, 4  ;;  %s19_s21 = sshll.u32 %s718_s20, 4  ;;  %s32_s19 = int_to_ptr.vmem [resolvable:$true] %s31_s19  ;;  %s758_s21 = int_to_ptr.vmem [resolvable:$true] %s19_s21 }
   0x5   :  { %s599_s24 = scalar_lea.hbm %s884_s1, 1024 }
   0x6   :  { %p600_p0 = scmp.ne.s32.totalorder %s884_s1, %s599_s24  ;;  %p603_p1 = scmp.lt.u32.totalorder %s599_s24, %s884_s1 }
   0x8   :  { %p605_p2 = pnand %p603_p1, %p600_p0 }
   0xa   :  { %608 = shalt.err (!%p605_p2)
}
   0xb   :  { %s609_s29 = scalar_lea.vmem %s32_s19, 1024  ;;  %p614_p4 = scmp.lt.s32.totalorder %s32_s19, %s32_s19 }
   0xc   :  { %p610_p3 = scmp.ne.s32.totalorder %s32_s19, %s609_s29  ;;  %p615_p5 = scmp.lt.s32.totalorder %s609_s29, %s609_s29 }
   0xe   :  { %p616_p6 = por %p615_p5, %p614_p4 }
  0x10   :  { %p617_p7 = pnand %p616_p6, %p610_p3 }
  0x12   :  { %620 = shalt.err (!%p617_p7)
}
  0x13   :  { %s719_s30 = smov 64   ;;  %s720_s6 = smov 4  }
  0x14   :  { %37 = dma.hbm_to_vmem [thread:$0]  %s884_s1, 1024, %s32_s19, [#allocation6], %s719_s30, %s719_s30, %s720_s6  }
  0x15   :  { %s621_s11 = scalar_lea.hbm %s883_s0, 128 }
  0x16   :  { %p622_p8 = scmp.ne.s32.totalorder %s883_s0, %s621_s11  ;;  %p625_p9 = scmp.lt.u32.totalorder %s621_s11, %s883_s0 }
  0x18   :  { %p627_p10 = pnand %p625_p9, %p622_p8 }
  0x1a   :  { %630 = shalt.err (!%p627_p10)
}
  0x1b   :  { %s631_s16 = scalar_lea.vmem %s758_s21, 128  ;;  %p636_p12 = scmp.lt.s32.totalorder %s758_s21, %s758_s21 }
  0x1c   :  { %p632_p11 = scmp.ne.s32.totalorder %s758_s21, %s631_s16  ;;  %p637_p13 = scmp.lt.s32.totalorder %s631_s16, %s631_s16 }
  0x1e   :  { %p638_p0 = por %p637_p13, %p636_p12 }
  0x20   :  { %p639_p1 = pnand %p638_p0, %p632_p11 }
  0x22   :  { %642 = shalt.err (!%p639_p1)
}
  0x23   :  { %25 = dma.hbm_to_vmem [thread:$0]  %s883_s0, 128, %s758_s21, [#allocation3], %s719_s30, %s719_s30, %s720_s6  }
  0x24   :  { %s721_s18 = smov [#allocation7]   ;;  %s722_s20 = smov [#allocation8]  }
  0x25   :  { %s43_s19 = sshll.u32 %s721_s18, 4  ;;  %s55_s22 = sshll.u32 %s722_s20, 4  ;;  %s44_s19 = int_to_ptr.vmem [resolvable:$true] %s43_s19  ;;  %s795_s22 = int_to_ptr.vmem [resolvable:$true] %s55_s22 }
  0x26   :  { %s643_s25 = scalar_lea.hbm %s885_s2, 1024 }
  0x27   :  { %p644_p2 = scmp.ne.s32.totalorder %s885_s2, %s643_s25  ;;  %p647_p3 = scmp.lt.u32.totalorder %s643_s25, %s885_s2 }
  0x29   :  { %p649_p4 = pnand %p647_p3, %p644_p2 }
  0x2b   :  { %652 = shalt.err (!%p649_p4)
}
  0x2c   :  { %s653_s0 = scalar_lea.vmem %s44_s19, 1024  ;;  %p658_p6 = scmp.lt.s32.totalorder %s44_s19, %s44_s19 }
  0x2d   :  { %p654_p5 = scmp.ne.s32.totalorder %s44_s19, %s653_s0  ;;  %p659_p7 = scmp.lt.s32.totalorder %s653_s0, %s653_s0 }
  0x2f   :  { %p660_p8 = por %p659_p7, %p658_p6 }
  0x31   :  { %p661_p9 = pnand %p660_p8, %p654_p5 }
  0x33   :  { %664 = shalt.err (!%p661_p9)
}
  0x34   :  { %49 = dma.hbm_to_vmem [thread:$0]  %s885_s2, 1024, %s44_s19, [#allocation6], %s719_s30, %s719_s30, %s720_s6  }
  0x35   :  { %s665_s10 = scalar_lea.hbm %s886_s3, 1024 }
  0x36   :  { %p666_p10 = scmp.ne.s32.totalorder %s886_s3, %s665_s10  ;;  %p669_p11 = scmp.lt.u32.totalorder %s665_s10, %s886_s3 }
  0x38   :  { %p671_p12 = pnand %p669_p11, %p666_p10 }
  0x3a   :  { %674 = shalt.err (!%p671_p12)
}
  0x3b   :  { %s675_s15 = scalar_lea.vmem %s795_s22, 1024  ;;  %p680_p0 = scmp.lt.s32.totalorder %s795_s22, %s795_s22 }
  0x3c   :  { %p676_p13 = scmp.ne.s32.totalorder %s795_s22, %s675_s15  ;;  %p681_p1 = scmp.lt.s32.totalorder %s675_s15, %s675_s15 }
  0x3e   :  { %p682_p2 = por %p681_p1, %p680_p0 }
  0x40   :  { %p683_p3 = pnand %p682_p2, %p676_p13 }
  0x42   :  { %686 = shalt.err (!%p683_p3)
}
  0x43   :  { %61 = dma.hbm_to_vmem [thread:$0]  %s886_s3, 1024, %s795_s22, [#allocation9], %s719_s30, %s719_s30, %s720_s6  }
  0x44   :  { %709 = dma.done.wait [#allocation3], 128  }
  0x45   :  { %710 = vsyncadd [#allocation3], 4294967168 }
  0x46   :  { %711 = dma.done.wait [#allocation6], 2048  }
  0x47   :  { %712 = vsyncadd [#allocation6], 4294965248 }
  0x48   :  { %713 = dma.done.wait [#allocation9], 1024  }
  0x49   :  { %714 = vsyncadd [#allocation9], 4294966272  ;;  %v723_v0 = vmov 0.0   ;;  %vm724_vm0 = vmmov 0   ;;  %v574_v1 = vld [vmem:[#allocation5] sm:$0xff]   ;;  %v575_v2 = vld [vmem:[#allocation5 + $0x8] sm:$0xff]  }
  0x4a   :  { %503 = vmatprep.subr.bf16.mxu0 %v723_v0  ;;  %519 = vmatprep.mubr.msk.bf16.mxu0 %vm724_vm0, %v723_v0  ;;  %v576_v3 = vld [vmem:[#allocation5 + $0x10] sm:$0xff]   ;;  %v583_v4 = vld [vmem:[#allocation7] sm:$0xff]   ;;  %v577_v5 = vld [vmem:[#allocation5 + $0x18] sm:$0xff]   ;;  %s725_s19 = smov [#allocation10]  }
  0x4b   :  { %523 = vmatprep.subr.bf16.mxu1 %v723_v0  ;;  %539 = vmatprep.mubr.msk.bf16.mxu1 %vm724_vm0, %v723_v0  ;;  %v584_v6 = vld [vmem:[#allocation7 + $0x8] sm:$0xff]   ;;  %v578_v7 = vld [vmem:[#allocation5 + $0x20] sm:$0xff]   ;;  %v585_v8 = vld [vmem:[#allocation7 + $0x10] sm:$0xff]   ;;  %s434_s20 = sshll.u32 %s725_s19, 4  ;;  %s435_s20 = int_to_ptr.vmem [resolvable:$true] %s434_s20 }
  0x4c   :  { %504 = vmatpush3.bf16.msra.mxu0 %v574_v1  ;;  %524 = vmatpush3.bf16.msra.mxu1 %v583_v4  ;;  %v579_v9 = vld [vmem:[#allocation5 + $0x28] sm:$0xff]   ;;  %v586_v10 = vld [vmem:[#allocation7 + $0x18] sm:$0xff]   ;;  %v580_v11 = vld [vmem:[#allocation5 + $0x30] sm:$0xff]   ;;  %s687_s22 = scalar_lea.vmem %s435_s20, 256  ;;  %p692_p5 = scmp.lt.s32.totalorder %s435_s20, %s435_s20 }
  0x4d   :  { %505 = vmatprep.subr.bf16.mxu0 %v723_v0  ;;  %525 = vmatprep.subr.bf16.mxu1 %v723_v0  ;;  %v587_v12 = vld [vmem:[#allocation7 + $0x20] sm:$0xff]   ;;  %v581_v13 = vld [vmem:[#allocation5 + $0x38] sm:$0xff]   ;;  %v588_v14 = vld [vmem:[#allocation7 + $0x28] sm:$0xff]   ;;  %p688_p4 = scmp.ne.s32.totalorder %s435_s20, %s687_s22  ;;  %p693_p6 = scmp.lt.s32.totalorder %s687_s22, %s687_s22 }
  0x4e   :  { %v582_v15 = vld [vmem:[#allocation2] sm:$0xff]   ;;  %v589_v16 = vld [vmem:[#allocation7 + $0x30] sm:$0xff]   ;;  %v591_v18 = vld [vmem:[#allocation8] sm:$0xff]  }
  0x4f   :  { %v590_v17 = vld [vmem:[#allocation7 + $0x38] sm:$0xff]   ;;  %v592_v19 = vld [vmem:[#allocation8 + $0x8] sm:$0xff]   ;;  %v593_v20 = vld [vmem:[#allocation8 + $0x10] sm:$0xff]   ;;  %p694_p7 = por %p693_p6, %p692_p5 }
  0x50   :  { %506 = vmatpush3.bf16.msra.mxu0 %v575_v2  ;;  %526 = vmatpush3.bf16.msra.mxu1 %v584_v6  ;;  %v594_v21 = vld [vmem:[#allocation8 + $0x18] sm:$0xff]   ;;  %v595_v22 = vld [vmem:[#allocation8 + $0x20] sm:$0xff]   ;;  %v596_v23 = vld [vmem:[#allocation8 + $0x28] sm:$0xff]  }
  0x51   :  { %507 = vmatprep.subr.bf16.mxu0 %v723_v0  ;;  %527 = vmatprep.subr.bf16.mxu1 %v723_v0  ;;  %v448_v24 = vld [vmem:[%s887_s4] ss:$0 sm:$0xff]  ;;  %v597_v34 = vld [vmem:[#allocation8 + $0x30] sm:$0xff]   ;;  %v458_v36 = vld [vmem:[%s887_s4 + $0x1] ss:$0 sm:$0xff]  ;;  %p695_p8 = pnand %p694_p7, %p688_p4 }
  0x52   :  { %v598_v35 = vld [vmem:[#allocation8 + $0x38] sm:$0xff]  }
  0x53   :  { %v467_v46 = vld [vmem:[%s887_s4 + $0x2] ss:$0 sm:$0xff] }
  0x54   :  { %508 = vmatpush3.bf16.msra.mxu0 %v576_v3  ;;  %528 = vmatpush3.bf16.msra.mxu1 %v585_v8 }
  0x55   :  { %509 = vmatprep.subr.bf16.mxu0 %v723_v0  ;;  %529 = vmatprep.subr.bf16.mxu1 %v723_v0 }
  0x58   :  { %510 = vmatpush3.bf16.msra.mxu0 %v577_v5  ;;  %530 = vmatpush3.bf16.msra.mxu1 %v586_v10 }
  0x59   :  { %511 = vmatprep.subr.bf16.mxu0 %v723_v0  ;;  %531 = vmatprep.subr.bf16.mxu1 %v723_v0 }
  0x5c   :  { %512 = vmatpush3.bf16.msra.mxu0 %v578_v7  ;;  %532 = vmatpush3.bf16.msra.mxu1 %v587_v12 }
  0x5d   :  { %513 = vmatprep.subr.bf16.mxu0 %v723_v0  ;;  %533 = vmatprep.subr.bf16.mxu1 %v723_v0 }
  0x60   :  { %514 = vmatpush3.bf16.msra.mxu0 %v579_v9  ;;  %534 = vmatpush3.bf16.msra.mxu1 %v588_v14 }
  0x61   :  { %515 = vmatprep.subr.bf16.mxu0 %v723_v0  ;;  %535 = vmatprep.subr.bf16.mxu1 %v723_v0 }
  0x64   :  { %516 = vmatpush3.bf16.msra.mxu0 %v580_v11  ;;  %536 = vmatpush3.bf16.msra.mxu1 %v589_v16 }
  0x65   :  { %517 = vmatprep.subr.bf16.mxu0 %v723_v0  ;;  %537 = vmatprep.subr.bf16.mxu1 %v723_v0 }
  0x68   :  { %518 = vmatpush3.bf16.msra.mxu0 %v581_v13  ;;  %538 = vmatpush3.bf16.msra.mxu1 %v590_v17 }
  0x69   :  { %543 = vmatprep.subr.bf16.mxu0 %v723_v0 }
  0x6b   :  { %520 = vmatmul.mubr.bf16.vlgmr.msra.gmra.mrb[0].mxu0 %v582_v15 }
  0x6c   :  { %559 = vmatprep.mubr.msk.bf16.mxu0 %vm724_vm0, %v723_v0  ;;  %544 = vmatpush3.bf16.msra.mxu0 %v591_v18 }
  0x6d   :  { %545 = vmatprep.subr.bf16.mxu0 %v723_v0 }
  0x70   :  { %546 = vmatpush3.bf16.msra.mxu0 %v592_v19 }
  0x71   :  { %547 = vmatprep.subr.bf16.mxu0 %v723_v0 }
  0x74   :  { %548 = vmatpush3.bf16.msra.mxu0 %v593_v20 }
  0x75   :  { %549 = vmatprep.subr.bf16.mxu0 %v723_v0 }
  0x78   :  { %550 = vmatpush3.bf16.msra.mxu0 %v594_v21 }
  0x79   :  { %551 = vmatprep.subr.bf16.mxu0 %v723_v0 }
  0x7c   :  { %552 = vmatpush3.bf16.msra.mxu0 %v595_v22 }
  0x7d   :  { %553 = vmatprep.subr.bf16.mxu0 %v723_v0 }
  0x80   :  { %554 = vmatpush3.bf16.msra.mxu0 %v596_v23 }
  0x81   :  { %555 = vmatprep.subr.bf16.mxu0 %v723_v0 }
  0x84   :  { %556 = vmatpush3.bf16.msra.mxu0 %v597_v34 }
  0x85   :  { %557 = vmatprep.subr.bf16.mxu0 %v723_v0 }
  0x88   :  { %558 = vmatpush3.bf16.msra.mxu0 %v598_v35 }
 0x13e   :  { %v190_v25 = vpop.f32.mrb[0].mxu0 }
 0x13f   :  { %v191_v26 = vadd.f32 %v448_v24, %v190_v25  ;;  %v521_v27 = vpop.f32.mrb[1].mxu0 }
 0x140   :  { %v193_v28 = vpop.f32.mrb[2].mxu0 }
 0x141   :  { %v194_v29 = vadd.f32 %v448_v24, %v193_v28  ;;  %v522_v30 = vpop.f32.mrb[3].mxu0  ;;  %v197_v31 = vmax.f32 %v191_v26, 0.0 }
 0x143   :  { %v198_v32 = vmax.f32 %v194_v29, 0.0 }
 0x145   :  { %v199_v33 = vpack.c.bf16 %v198_v32, %v197_v31 }
 0x147   :  { %540 = vmatmul.mubr.bf16.vlgmr.msra.gmra.mrb[0].mxu1 %v199_v33 }
 0x21a   :  { %v305_v37 = vpop.f32.mrb[0].mxu1 }
 0x21b   :  { %v306_v38 = vadd.f32 %v458_v36, %v305_v37  ;;  %v541_v39 = vpop.f32.mrb[1].mxu1 }
 0x21c   :  { %v308_v40 = vpop.f32.mrb[2].mxu1 }
 0x21d   :  { %v309_v41 = vadd.f32 %v458_v36, %v308_v40  ;;  %v542_v42 = vpop.f32.mrb[3].mxu1  ;;  %v312_v43 = vmax.f32 %v306_v38, 0.0 }
 0x21f   :  { %v313_v44 = vmax.f32 %v309_v41, 0.0 }
 0x221   :  { %v314_v45 = vpack.c.bf16 %v313_v44, %v312_v43 }
 0x223   :  { %560 = vmatmul.mubr.bf16.vlgmr.msra.gmra.mrb[4].mxu0 %v314_v45 }
 0x2f6   :  { %v420_v47 = vpop.f32.mrb[4].mxu0 }
 0x2f7   :  { %v421_v48 = vadd.f32 %v467_v46, %v420_v47  ;;  %v561_v49 = vpop.f32.mrb[5].mxu0 }
 0x2f8   :  { %v423_v50 = vpop.f32.mrb[6].mxu0 }
 0x2f9   :  { %427 = vst [vmem:[#allocation10] sm:$0xff] %v421_v48  ;;  %v424_v51 = vadd.f32 %v467_v46, %v423_v50  ;;  %v562_v52 = vpop.f32.mrb[7].mxu0 }
 0x2fb   :  { %428 = vst [vmem:[#allocation10 + $0x8] sm:$0xff] %v424_v51 }
 0x2fc   :  { %698 = shalt.err (!%p695_p8)
}
 0x2fd   :  { %s699_s24 = scalar_lea.hbm %s888_s5, 256 }
 0x2fe   :  { %p700_p9 = scmp.ne.s32.totalorder %s888_s5, %s699_s24  ;;  %p703_p10 = scmp.lt.u32.totalorder %s699_s24, %s888_s5 }
 0x300   :  { %p705_p11 = pnand %p703_p10, %p700_p9 }
 0x302   :  { %708 = shalt.err (!%p705_p11)
}
 0x303   :  { %s726_s29 = smov 128   ;;  %s727_s0 = smov 8  }
 0x304   :  { %440 = dma.vmem_to_hbm [thread:$0]  %s435_s20, 256, %s888_s5, [#allocation4], %s726_s29, %s726_s29, %s727_s0  }
 0x305   :  { %715 = dma.done.wait [#allocation4], 256  }
 0x306   :  { %716 = vsyncadd [#allocation4], 4294967040 }
 0x307   :  { %444 = vsyncpa [#allocation3], 1 }
 0x308   :  { %445 = vsyncpa [#allocation6], 1 }
 0x309   :  { %446 = vsyncpa [#allocation9], 1 }
 0x30a   :  { %447 = vsyncpa [#allocation4], 1 }

</bundles_post_ra>
